<compile_context>
chip_gen: v5e
topology: v5e:2x2
jax: 0.10.0
libtpu: 0.0.40
codegen_flags: <defaults>
</compile_context>

<pallas_src>
import functools

import jax
import jax.numpy as jnp
from jax.experimental import pallas as pl
from jax.experimental.pallas import tpu as pltpu


# v5e/v6e have 128 MiB physical VMEM, v7x has 64 MiB; with the Bp-tiled online
# LSE the actual footprint is a few MiB, so 64 MiB is a safe ceiling everywhere.
# (On v6e one could raise this to ~96 MiB and keep p_reps resident instead.)
_VMEM_LIMIT_BYTES = 64 * 1024 * 1024


def _choose_tile(n, pref=512):
    """Pick a batch tile: the largest 128-multiple divisor of n that is <= pref
    AND leaves >= 2 grid steps (keeps both v7x TensorCores busy and amortizes
    the ~0.35 us per-step overhead with 512-row tiles); otherwise fall back to
    the whole batch as one full-extent block (small / ragged demo shapes)."""
    if n % 128 == 0:
        t = min(pref, (n // 2) // 128 * 128)   # cap so n // t >= 2
        while t >= 128:
            if n % t == 0:
                return t
            t -= 128
    return n


# ----------------------------------------------------------------------------
# Kernel 1: tied LinearHead + L2 normalize on already-pooled [B, H] rows.
# ----------------------------------------------------------------------------
def _encode_kernel(pooled_ref, w_ref, b_ref, rep32_ref, rep16_ref, *, normalize):
    # pooled_ref: [bB, H] bf16 ; w_ref: [H, D] bf16 ; b_ref: [1, D] f32.
    reps = jnp.dot(pooled_ref[...], w_ref[...],
                   preferred_element_type=jnp.float32) + b_ref[...]
    if normalize:
        # F.normalize(dim=1): x / max(||x||, 1e-12) == x * rsqrt(max(||x||^2, 1e-24))
        sq = jnp.sum(reps * reps, axis=-1, keepdims=True)
        reps = reps * jax.lax.rsqrt(jnp.maximum(sq, 1e-24))   # EUP slot, ~free
    rep32_ref[...] = reps                                     # caller-facing f32
    rep16_ref[...] = reps.astype(jnp.bfloat16)                # feeds score MXU


def encode_pooled(pooled_bf16, w_bf16, b_f32, *, normalize):
    B, H = pooled_bf16.shape
    D = w_bf16.shape[1]
    bB = _choose_tile(B)
    assert B % bB == 0, "batch tile must divide the fused batch"
    kernel = functools.partial(_encode_kernel, normalize=normalize)
    return pl.pallas_call(
        kernel,
        out_shape=(jax.ShapeDtypeStruct((B, D), jnp.float32),
                   jax.ShapeDtypeStruct((B, D), jnp.bfloat16)),
        grid_spec=pltpu.PrefetchScalarGridSpec(
            num_scalar_prefetch=0,
            grid=(B // bB,),
            in_specs=[
                pl.BlockSpec((bB, H), lambda i: (i, 0)),   # pipelined over batch
                # TODO(synk): pipeline_mode=pl.Buffered(1) on these constant-index
                #             blocks would halve their VMEM (they never change).
                pl.BlockSpec((H, D), lambda i: (0, 0)),    # head W resident
                pl.BlockSpec((1, D), lambda i: (0, 0)),    # head b resident
            ],
            out_specs=(pl.BlockSpec((bB, D), lambda i: (i, 0)),
                       pl.BlockSpec((bB, D), lambda i: (i, 0))),
        ),
        compiler_params=pltpu.CompilerParams(
            dimension_semantics=("parallel",),             # megacore on v7x
            vmem_limit_bytes=_VMEM_LIMIT_BYTES,
        ),
    )(pooled_bf16, w_bf16, b_f32.reshape(1, D))


# ----------------------------------------------------------------------------
# Kernel 2: scores = q @ p^T (bf16 MXU, f32 acc) + per-row cross-entropy NLL,
#           tiled over query rows (parallel) AND passage rows (arbitrary)
#           with online log-sum-exp so p_reps is never fully VMEM-resident.
# ----------------------------------------------------------------------------
def _score_loss_kernel(q_ref, p_ref, scores_ref, nll_ref,
                       m_sc, l_sc, t_sc, *, n_passages, tp):
    i = pl.program_id(0)          # query-row tile
    j = pl.program_id(1)          # passage-row tile (reduction axis, last)

    @pl.when(j == 0)
    def _():
        m_sc[...] = jnp.full(m_sc.shape, -jnp.inf, dtype=m_sc.dtype)
        l_sc[...] = jnp.zeros(l_sc.shape, dtype=l_sc.dtype)
        t_sc[...] = jnp.zeros(t_sc.shape, dtype=t_sc.dtype)

    # Contract on D without materializing p.T; bf16 operands -> single-pass MXU.
    s = jax.lax.dot_general(
        q_ref[...], p_ref[...],
        dimension_numbers=(((1,), (1,)), ((), ())),
        preferred_element_type=jnp.float32)                   # [tq, tp] f32
    scores_ref[...] = s                                       # lane-dense block

    tq = s.shape[0]
    # Online log-sum-exp over the Bp axis.
    m_prev = m_sc[...]
    m_new = jnp.maximum(m_prev, jnp.max(s, axis=-1, keepdims=True))
    l_sc[...] = (jnp.exp(m_prev - m_new) * l_sc[...]
                 + jnp.sum(jnp.exp(s - m_new), axis=-1, keepdims=True))
    m_sc[...] = m_new

    # target[row_global] = row_global * n_passages; exactly one j block holds it.
    row = jax.lax.broadcasted_iota(jnp.int32, (tq, 1), 0) + i * tq
    col = jax.lax.broadcasted_iota(jnp.int32, s.shape, 1) + j * tp
    t_sc[...] += jnp.sum(jnp.where(col == row * n_passages, s, 0.0),
                         axis=-1, keepdims=True)

    @pl.when(j == pl.num_programs(1) - 1)
    def _():
        nll_ref[...] = m_sc[...] + jnp.log(l_sc[...]) - t_sc[...]   # [tq, 1]


def score_and_loss(q_bf16, p_bf16, *, train_n_passages):
    Bq, D = q_bf16.shape
    Bp, _ = p_bf16.shape
    # CE targets i*train_n_passages must index valid columns of [Bq, Bp].
    assert (Bq - 1) * train_n_passages < Bp, "cross-entropy target out of range"
    tq = _choose_tile(Bq)
    tp = _choose_tile(Bp)
    assert Bq % tq == 0 and Bp % tp == 0
    kernel = functools.partial(_score_loss_kernel,
                               n_passages=train_n_passages, tp=tp)
    scores, nll = pl.pallas_call(
        kernel,
        out_shape=(
            jax.ShapeDtypeStruct((Bq, Bp), jnp.float32),   # caller-facing scores
            jax.ShapeDtypeStruct((Bq, 1), jnp.float32),    # per-row NLL
        ),
        grid_spec=pltpu.PrefetchScalarGridSpec(
            num_scalar_prefetch=0,
            grid=(Bq // tq, Bp // tp),                     # reduction axis last
            in_specs=[
                pl.BlockSpec((tq, D), lambda i, j: (i, 0)),   # q rows pipelined
                pl.BlockSpec((tp, D), lambda i, j: (j, 0)),   # p rows pipelined
            ],
            out_specs=(
                pl.BlockSpec((tq, tp), lambda i, j: (i, j)),  # lane-dense slab
                pl.BlockSpec((tq, 1), lambda i, j: (i, 0)),   # written at last j
            ),
            scratch_shapes=[pltpu.VMEM((tq, 1), jnp.float32),   # running max
                            pltpu.VMEM((tq, 1), jnp.float32),   # running sum-exp
                            pltpu.VMEM((tq, 1), jnp.float32)],  # target score
        ),
        compiler_params=pltpu.CompilerParams(
            dimension_semantics=("parallel", "arbitrary"),
            vmem_limit_bytes=_VMEM_LIMIT_BYTES,
        ),
    )(q_bf16, p_bf16)
    return scores, nll


# ----------------------------------------------------------------------------
# DRModel forward (tied encoders, pooling='first', LinearHead, normalize)
# ----------------------------------------------------------------------------
def dr_model_forward(q_hidden, p_hidden, head_w, head_b,
                     *, normalize=True, train_n_passages=2):
    Bq = q_hidden.shape[0]

    # pooling='first': take token 0 in the wrapper (B*H elems, not B*L*H), cast
    # to bf16 BEFORE concatenating so XLA never materializes an f32 fused batch.
    # Tied head -> fuse q and p batches into a single encode pallas_call
    # (head W/b DMA'd once, larger MXU M dim, one pipeline ramp).
    pooled_bf16 = jnp.concatenate(
        [q_hidden[:, 0, :].astype(jnp.bfloat16),
         p_hidden[:, 0, :].astype(jnp.bfloat16)], axis=0)
    w_bf16 = head_w.astype(jnp.bfloat16)

    reps_f32, reps_bf16 = encode_pooled(pooled_bf16, w_bf16, head_b,
                                        normalize=normalize)
    q_reps, p_reps = reps_f32[:Bq], reps_f32[Bq:]

    scores, nll = score_and_loss(reps_bf16[:Bq], reps_bf16[Bq:],
                                 train_n_passages=train_n_passages)
    loss = jnp.mean(nll)                               # CE reduction='mean'
    return {"q_reps": q_reps, "p_reps": p_reps, "scores": scores, "loss": loss}


if __name__ == "__main__":
    key = jax.random.PRNGKey(0)
    k1, k2, k3, k4 = jax.random.split(key, 4)

    Bq = 4                       # queries per batch
    train_n_passages = 2         # passages per query
    Bp = Bq * train_n_passages   # total passages
    L = 8                        # seq length
    H = 32                       # backbone hidden size (projection_in_dim)
    D = 32                       # projection_out_dim
    # TODO(synk): production H/D should be multiples of 128 (lane-dense stores,
    #             full MXU tiles); demo shapes lower because blocks == full dims.

    q_hidden = jax.random.normal(k1, (Bq, L, H), dtype=jnp.float32)
    p_hidden = jax.random.normal(k2, (Bp, L, H), dtype=jnp.float32)
    head_w = jax.random.normal(k3, (H, D), dtype=jnp.float32) * 0.05
    head_b = jax.random.normal(k4, (D,), dtype=jnp.float32) * 0.01

    out = dr_model_forward(q_hidden, p_hidden, head_w, head_b,
                           normalize=True, train_n_passages=train_n_passages)
    jax.block_until_ready(out)

    # Plain-JAX reference with the same intended precision: bf16 MXU operands /
    # f32 accumulation for both the head and the score matmuls, f32 elsewhere.
    def ref():
        wb = head_w.astype(jnp.bfloat16)

        def enc(h):
            r = jnp.dot(h[:, 0, :].astype(jnp.bfloat16), wb,
                        preferred_element_type=jnp.float32) + head_b
            n = jnp.sqrt(jnp.sum(r * r, axis=1, keepdims=True))
            return r / jnp.maximum(n, 1e-12)

        qr, pr = enc(q_hidden), enc(p_hidden)
        sc = jnp.dot(qr.astype(jnp.bfloat16), pr.astype(jnp.bfloat16).T,
                     preferred_element_type=jnp.float32)
        tgt = jnp.arange(Bq) * train_n_passages
        lse = jax.scipy.special.logsumexp(sc, axis=-1)
        loss = jnp.mean(lse - sc[jnp.arange(Bq), tgt])
        return qr, pr, sc, loss

    qr_ref, pr_ref, sc_ref, loss_ref = ref()
    assert jnp.allclose(out["q_reps"], qr_ref, atol=2e-3), "q_reps mismatch"
    assert jnp.allclose(out["p_reps"], pr_ref, atol=2e-3), "p_reps mismatch"
    assert jnp.allclose(out["scores"], sc_ref, atol=2e-3), "scores mismatch"
    assert jnp.allclose(out["loss"], loss_ref, atol=2e-3), "loss mismatch"

    print("KERNEL_OK")
</pallas_src>

<mosaic_0001>
module attributes {stable_mosaic.version = 11 : i64} {
  func.func @_encode_kernel(%arg0: i32, %arg1: memref<12x32xbf16, #tpu.memory_space<vmem>>, %arg2: memref<32x32xbf16, #tpu.memory_space<vmem>>, %arg3: memref<1x32xf32, #tpu.memory_space<vmem>>, %arg4: memref<12x32xf32, #tpu.memory_space<vmem>>, %arg5: memref<12x32xbf16, #tpu.memory_space<vmem>>) attributes {dimension_semantics = [#tpu.dimension_semantics<parallel>], iteration_bounds = array<i64: 1>, scalar_prefetch = 0 : i64, scratch_operands = 0 : i64, tpu.core_type = #tpu.core_type<tc>, window_params = [{transform_indices = @transform_0, window_bounds = array<i64: 12, 32>}, {pipeline_mode = #tpu.pipeline_mode<synchronous>, transform_indices = @transform_1, window_bounds = array<i64: 32, 32>}, {pipeline_mode = #tpu.pipeline_mode<synchronous>, transform_indices = @transform_2, window_bounds = array<i64: 1, 32>}, {transform_indices = @transform_3, window_bounds = array<i64: 12, 32>}, {transform_indices = @transform_4, window_bounds = array<i64: 12, 32>}]} {
    %c0 = arith.constant 0 : index
    %c0_0 = arith.constant 0 : index
    %0 = vector.load %arg1[%c0, %c0_0] : memref<12x32xbf16, #tpu.memory_space<vmem>>, vector<12x32xbf16>
    %c0_1 = arith.constant 0 : index
    %c0_2 = arith.constant 0 : index
    %1 = vector.load %arg2[%c0_1, %c0_2] : memref<32x32xbf16, #tpu.memory_space<vmem>>, vector<32x32xbf16>
    %cst = arith.constant dense<0.000000e+00> : vector<12x32xf32>
    %2 = tpu.matmul %0, %1, %cst {dimension_numbers = #tpu.dot_dimension_numbers<[1], [0], [0], [1], [0, 0, 1, 1], [], []>} : vector<12x32xbf16>, vector<32x32xbf16>, vector<12x32xf32> -> vector<12x32xf32>
    %c0_3 = arith.constant 0 : index
    %c0_4 = arith.constant 0 : index
    %3 = vector.load %arg3[%c0_3, %c0_4] : memref<1x32xf32, #tpu.memory_space<vmem>>, vector<1x32xf32>
    %4 = vector.broadcast %3 : vector<1x32xf32> to vector<12x32xf32>
    %5 = arith.addf %2, %4 : vector<12x32xf32>
    %6 = arith.mulf %5, %5 : vector<12x32xf32>
    %cst_5 = arith.constant dense<0.000000e+00> : vector<12xf32>
    %7 = vector.multi_reduction <add>, %6, %cst_5 [1] : vector<12x32xf32> to vector<12xf32>
    %8 = vector.shape_cast %7 : vector<12xf32> to vector<12x1xf32>
    %cst_6 = arith.constant 1.000000e-24 : f32
    %9 = vector.broadcast %cst_6 : f32 to vector<12x1xf32>
    %10 = arith.maximumf %8, %9 : vector<12x1xf32>
    %11 = math.rsqrt %10 : vector<12x1xf32>
    %12 = vector.broadcast %11 : vector<12x1xf32> to vector<12x32xf32>
    %13 = arith.mulf %5, %12 : vector<12x32xf32>
    %c0_7 = arith.constant 0 : index
    %c0_8 = arith.constant 0 : index
    %14 = vector.load %arg4[%c0_7, %c0_8] : memref<12x32xf32, #tpu.memory_space<vmem>>, vector<12x32xf32>
    tpu.vector_store %arg4[%c0_7, %c0_8], %13 {strides = array<i32>} : memref<12x32xf32, #tpu.memory_space<vmem>>, vector<12x32xf32>,
    %15 = arith.truncf %13 : vector<12x32xf32> to vector<12x32xbf16>
    %c0_9 = arith.constant 0 : index
    %c0_10 = arith.constant 0 : index
    %16 = vector.load %arg5[%c0_9, %c0_10] : memref<12x32xbf16, #tpu.memory_space<vmem>>, vector<12x32xbf16>
    tpu.vector_store %arg5[%c0_9, %c0_10], %15 {strides = array<i32>} : memref<12x32xbf16, #tpu.memory_space<vmem>>, vector<12x32xbf16>,
    return
  }
  func.func @transform_0(%arg0: i32) -> (i32, i32) {
    %c0_i32 = arith.constant 0 : i32
    %c0_i32_0 = arith.constant 0 : i32
    return %arg0, %c0_i32 : i32, i32
  }
  func.func @transform_1(%arg0: i32) -> (i32, i32) {
    %c0_i32 = arith.constant 0 : i32
    %c0_i32_0 = arith.constant 0 : i32
    %c0_i32_1 = arith.constant 0 : i32
    return %c0_i32, %c0_i32_0 : i32, i32
  }
  func.func @transform_2(%arg0: i32) -> (i32, i32) {
    %c0_i32 = arith.constant 0 : i32
    %c0_i32_0 = arith.constant 0 : i32
    %c0_i32_1 = arith.constant 0 : i32
    return %c0_i32, %c0_i32_0 : i32, i32
  }
  func.func @transform_3(%arg0: i32) -> (i32, i32) {
    %c0_i32 = arith.constant 0 : i32
    %c0_i32_0 = arith.constant 0 : i32
    return %arg0, %c0_i32 : i32, i32
  }
  func.func @transform_4(%arg0: i32) -> (i32, i32) {
    %c0_i32 = arith.constant 0 : i32
    %c0_i32_0 = arith.constant 0 : i32
    return %arg0, %c0_i32 : i32, i32
  }
}

</mosaic_0001>

<bundles_post_ra>
// kernel: tpu_custom_call.1
= control target key start
LH: loop header
LB: loop body
LE: loop exit
PB: predicated region body
PF: predicated region fallthrough
CT: control target
= control target key end

     0   :  { %10 = vsyncpa [#allocation3], 0  ;;  %s370_s0 = inlined_call_operand.hbm [shape: bf16[12,32], index: 0, kind: input, shape index: {}]   ;;  %s371_s1 = inlined_call_operand.hbm [shape: bf16[32,32], index: 1, kind: input, shape index: {}]   ;;  %s372_s2 = inlined_call_operand.vmem [shape: f32[1,32], index: 2, kind: input, shape index: {}]   ;;  %s373_s3 = inlined_call_operand.hbm [shape: f32[12,32], index: 3, kind: output, shape index: {0}]   ;;  %s374_s4 = inlined_call_operand.hbm [shape: bf16[12,32], index: 4, kind: output, shape index: {1}]  }
   0x1   :  { %11 = vsyncpa [#allocation6], 0 }
   0x2   :  { %12 = vsyncpa [#allocation4], 0 }
   0x3   :  { %13 = vsyncpa [#allocation9], 0  ;;  %s18_s17 = sshll.u32 %s370_s0, 4  ;;  %s307_s18 = smov [#allocation2]   ;;  %s19_s17 = int_to_ptr.hbm [resolvable:$true] %s18_s17 }
   0x4   :  { %s20_s19 = sshll.u32 %s307_s18, 4  ;;  %s31_s22 = sshll.u32 %s371_s1, 4  ;;  %s21_s19 = int_to_ptr.vmem [resolvable:$true] %s20_s19  ;;  %s32_s22 = int_to_ptr.hbm [resolvable:$true] %s31_s22 }
   0x5   :  { %s308_s23 = smov 64   ;;  %s309_s24 = smov 4  }
   0x6   :  { %26 = dma.hbm_to_vmem [thread:$0]  %s19_s17, 128, %s21_s19, [#allocation3], %s308_s23, %s308_s23, %s309_s24  }
   0x7   :  { %s310_s25 = smov [#allocation5]  }
   0x8   :  { %s33_s26 = sshll.u32 %s310_s25, 4  ;;  %s34_s26 = int_to_ptr.vmem [resolvable:$true] %s33_s26 }
   0x9   :  { %39 = dma.hbm_to_vmem [thread:$0]  %s32_s22, 256, %s34_s26, [#allocation6], %s308_s23, %s308_s23, %s309_s24  }
   0xa   :  { %299 = dma.done.wait [#allocation3], 128  }
   0xb   :  { %300 = vsyncadd [#allocation3], 4294967168 }
   0xc   :  { %301 = dma.done.wait [#allocation6], 256  }
   0xd   :  { %302 = vsyncadd [#allocation6], 4294967040  ;;  %v189_v0 = vld [vmem:[#allocation5 + $0x8] sm:$0xff]  ;;  %v188_v1 = vld [vmem:[#allocation5] sm:$0xff]  ;;  %vm78_vm0 = vcmask 261120   ;;  %vm101_vm1 = vcmask 257024  }
   0xe   :  { %88 = vmatpush.bf16.msra.mxu0 %v189_v0  ;;  %v176_v2 = vld [vmem:[#allocation2] sm:$0xf]  ;;  %v187_v3 = vld [vmem:[#allocation2] sm:$0x30]  ;;  %s142_s30 = sshll.u32 %s373_s3, 4  ;;  %s312_s5 = smov [#allocation8]   ;;  %s143_s30 = int_to_ptr.hbm [resolvable:$true] %s142_s30 }
   0xf   :  { %v177_v4 = vor.u32 %v187_v3, %v176_v2  ;;  %v198_v5 = vld [vmem:[%s372_s2] ss:$0 sm:$0xff]  ;;  %s311_s2 = smov [#allocation7]   ;;  %s153_s6 = sshll.u32 %s312_s5, 4  ;;  %vm134_vm8 = vcmask 254976   ;;  %s154_s6 = int_to_ptr.vmem [resolvable:$true] %s153_s6 }
  0x10   :  { %s140_s27 = sshll.u32 %s311_s2, 4  ;;  %s155_s9 = sshll.u32 %s374_s4, 4  ;;  %s141_s27 = int_to_ptr.vmem [resolvable:$true] %s140_s27  ;;  %s156_s9 = int_to_ptr.hbm [resolvable:$true] %s155_s9 }
  0x11   :  { %s313_s3 = smov 128   ;;  %s314_s10 = smov 8  }
  0x12   :  { %89 = vmatpush.bf16.msra.mxu0 %v188_v1 }
  0x15   :  { %186 = vmatmul.msk.bf16.vlgmr.msra.gmra.mxu0 %vm78_vm0, %v177_v4 }
  0x92   :  { %v91_v6 = vpop.f32.mrf.mxu0 }
  0x93   :  { %v92_v7 = vadd.f32 %v198_v5, %v91_v6 }
  0x95   :  { %v96_v8 = vmul.f32 %v92_v7, %v92_v7 }
  0x97   :  { %v98_v9 = vsel %vm78_vm0, %v96_v8, 0.0 }
  0x98   :  { %99 = vadd.xlane.f32.xlu0 %v98_v9 }
  0x9a   :  { %v93_v10 = vpop.f32.mrf.mxu0 }
  0x9b   :  { %v94_v11 = vadd.f32 %v198_v5, %v93_v10 }
  0x9d   :  { %v97_v12 = vmul.f32 %v94_v11, %v94_v11 }
  0x9f   :  { %v102_v13 = vsel %vm101_vm1, %v97_v12, 0.0 }
  0xa0   :  { %103 = vadd.xlane.f32.xlu0 %v102_v13 }
 0x10b   :  { %v100_v14 = vpop.xlane.xlu0 %99 }
 0x10c   :  { %v105_v15 = vmax.f32 %v100_v14, 1e-24 }
 0x10e   :  { %199 = vrsqrt.f32 %v105_v15  ;;  %vm113_vm3 = vweird.f32 %v105_v15 }
 0x113   :  { %v104_v16 = vpop.xlane.xlu0 %103 }
 0x114   :  { %v200_v17 = vpop.eup %199  ;;  %v106_v18 = vmax.f32 %v104_v16, 1e-24 }
 0x115   :  { %v108_v19 = vmul.f32 %v200_v17, %v105_v15  ;;  %vm114_vm2 = vweird.f32 %v200_v17 }
 0x116   :  { %201 = vrsqrt.f32 %v106_v18  ;;  %vm115_vm4 = vmor %vm113_vm3, %vm114_vm2  ;;  %vm123_vm6 = vweird.f32 %v106_v18 }
 0x117   :  { %v109_v20 = vmul.f32 %v200_v17, %v108_v19 }
 0x119   :  { %v110_v21 = vmul.f32 0.5, %v109_v20 }
 0x11b   :  { %v111_v22 = vsub.f32 1.5, %v110_v21 }
 0x11c   :  { %v202_v23 = vpop.eup %201 }
 0x11d   :  { %v112_v24 = vmul.f32 %v200_v17, %v111_v22  ;;  %v118_v25 = vmul.f32 %v202_v23, %v106_v18  ;;  %vm124_vm5 = vweird.f32 %v202_v23 }
 0x11e   :  { %vm125_vm7 = vmor %vm123_vm6, %vm124_vm5 }
 0x11f   :  { %v116_v26 = vsel %vm115_vm4, %v200_v17, %v112_v24  ;;  %v119_v27 = vmul.f32 %v202_v23, %v118_v25 }
 0x120   :  { %v127_v28 = vmul.f32 %v116_v26, %v92_v7 }
 0x121   :  { %v120_v29 = vmul.f32 0.5, %v119_v27 }
 0x122   :  { %129 = vst.msk [vmem:[#allocation7] sm:$0xff] %vm78_vm0, %v127_v28  ;;  %v131_v30 = vpack.c.bf16 %v127_v28, %v127_v28 }
 0x123   :  { %v121_v31 = vsub.f32 1.5, %v120_v29 }
 0x124   :  { %133 = vst.msk [vmem:[#allocation8] sm:$0xf] %vm101_vm1, %v131_v30 }
 0x125   :  { %v122_v32 = vmul.f32 %v202_v23, %v121_v31 }
 0x127   :  { %v126_v33 = vsel %vm125_vm7, %v202_v23, %v122_v32 }
 0x128   :  { %v128_v34 = vmul.f32 %v126_v33, %v94_v11 }
 0x12a   :  { %130 = vst.msk [vmem:[#allocation7 + $0x8] sm:$0xf] %vm101_vm1, %v128_v34  ;;  %v132_v35 = vpack.c.bf16 %v128_v34, %v128_v34 }
 0x12b   :  { %148 = dma.vmem_to_hbm [thread:$0]  %s141_s27, 256, %s143_s30, [#allocation4], %s313_s3, %s313_s3, %s314_s10  }
 0x12c   :  { %135 = vst.msk [vmem:[#allocation8 + $0x4] sm:$0x3] %vm134_vm8, %v132_v35 }
 0x12d   :  { %161 = dma.vmem_to_hbm [thread:$0]  %s154_s6, 128, %s156_s9, [#allocation9], %s308_s23, %s308_s23, %s309_s24  }
 0x12e   :  { %303 = dma.done.wait [#allocation4], 256  }
 0x12f   :  { %304 = vsyncadd [#allocation4], 4294967040 }
 0x130   :  { %305 = dma.done.wait [#allocation9], 128  }
 0x131   :  { %306 = vsyncadd [#allocation9], 4294967168 }
 0x132   :  { %170 = vsyncpa [#allocation3], 1 }
 0x133   :  { %171 = vsyncpa [#allocation6], 1 }
 0x134   :  { %172 = vsyncpa [#allocation4], 1 }
 0x135   :  { %173 = vsyncpa [#allocation9], 1 }

</bundles_post_ra>
